<compile_context>
chip_gen: v7x
topology: tpu7x:2x2x1
jax: 0.10.0
libtpu: 0.0.40
codegen_flags: <defaults>
</compile_context>

<pallas_src>
import jax
import jax.numpy as jnp
from jax import lax
from jax.experimental import pallas as pl
from jax.experimental.pallas import tpu as pltpu


def mlp_kernel(xT_ref, w1_ref, b1_ref, w2_ref, b2_ref, oT_ref):
    """Transposed (batch-on-lanes) fused MLP: oT = W2 @ relu(W1 @ xT + b1) + b2."""
    xT = xT_ref[...].astype(w1_ref.dtype)                        # (n_in, tm)
    # Layer 1: torch-layout W1 (n_hidden, n_in) is the LHS of a native
    # [m,k]@[k,n] contraction — no transposes anywhere in the kernel.
    h = lax.dot_general(w1_ref[...], xT,
                        dimension_numbers=(((1,), (0,)), ((), ())),
                        preferred_element_type=jnp.float32)       # (n_hidden, tm)
    h = jnp.maximum(h + b1_ref[...], 0.0)                         # f32 epilogue
    # Layer 2: W2 (n_out, n_hidden) @ h (n_hidden, tm).
    y = lax.dot_general(w2_ref[...], h.astype(w2_ref.dtype),
                        dimension_numbers=(((1,), (0,)), ((), ())),
                        preferred_element_type=jnp.float32)       # (n_out, tm)
    oT_ref[...] = (y + b2_ref[...]).astype(oT_ref.dtype)


def prepare_params(w1, b1, w2, b2, *, param_dtype=jnp.float32):
    """One-time layout/dtype prep (call once at init, outside the forward).

    Weights keep the torch (out_features, in_features) layout: in the
    transposed (batch-on-lanes) kernel they are the *LHS* of a native MXU
    contraction, so they never need transposing.  Biases become (n, 1) columns
    that broadcast along the lane (batch) axis and stay f32 so the epilogue is
    f32 on every chip generation.  Set param_dtype=jnp.bfloat16 to halve
    streamed weight/activation bytes on v6e/v7x (accumulation stays f32).
    """
    return (w1.astype(param_dtype),
            b1.astype(jnp.float32).reshape(-1, 1),
            w2.astype(param_dtype),
            b2.astype(jnp.float32).reshape(-1, 1))


_VMEM_LIMIT_CACHE = None


def _vmem_limit_bytes():
    """Generation-aware scoped-VMEM cap: ~3/4 of physical VMEM.
    v5e/v6e (128 MiB physical) -> ~96 MiB; v7x (64 MiB physical) -> 48 MiB."""
    global _VMEM_LIMIT_CACHE
    if _VMEM_LIMIT_CACHE is None:
        try:
            phys = int(pltpu.get_tpu_info().vmem_capacity_bytes)
        except Exception:
            phys = 64 * 1024 * 1024          # conservative: fits every generation
        _VMEM_LIMIT_CACHE = min((phys * 3) // 4, 100 * 1024 * 1024)
    return _VMEM_LIMIT_CACHE


def _choose_batch_tile(B, tm_max):
    """Batch tile along the 128-lane axis.

    - multiple of 128 (lane rule) unless it covers the whole batch,
    - capped at tm_max (default 4096: a (16, 4096) f32 tile is only 256 KiB,
      far below any generation's VMEM, yet big enough to amortize the
      ~0.35 µs per-grid-step overhead many times over),
    - for batches > 256 the tile is at most ceil(B/2) rounded up to 128, so the
      grid always has >= 2 steps and v7x's two TensorCores both get work.
    """
    tm_max = max(128, (tm_max // 128) * 128)
    if B <= 256:
        return B                              # single full-batch tile (tiny case)
    half = pl.cdiv(B, 2)
    return min(128 * pl.cdiv(half, 128), tm_max)


_SINGLE_BUFFER_PARAMS_OK = True               # flipped off if pl.Buffered(1) is rejected


def _resident_spec(shape, single_buffer):
    # Constant index_map: the block never changes across the grid. Buffered(1)
    # additionally avoids allocating a pointless second buffer for it.
    if single_buffer:
        return pl.BlockSpec(shape, lambda i: (0, 0), pipeline_mode=pl.Buffered(1))
    return pl.BlockSpec(shape, lambda i: (0, 0))


def _forward_transposed(xT, w1, b1c, w2, b2c, tm, out_dtype, single_buffer):
    n_in, B = xT.shape
    n_hidden = w1.shape[0]
    n_out = w2.shape[0]
    grid = (pl.cdiv(B, tm),)

    flops = 2 * B * (n_in * n_hidden + n_hidden * n_out)
    bytes_accessed = (B * n_in * xT.dtype.itemsize
                      + B * n_out * jnp.dtype(out_dtype).itemsize
                      + (w1.size + w2.size) * w1.dtype.itemsize
                      + (b1c.size + b2c.size) * 4)

    return pl.pallas_call(
        mlp_kernel,
        out_shape=jax.ShapeDtypeStruct((n_out, B), out_dtype),
        grid=grid,
        in_specs=[
            pl.BlockSpec((n_in, tm), lambda i: (0, i)),        # streamed activations
            _resident_spec((n_hidden, n_in), single_buffer),   # W1 (VMEM-resident)
            _resident_spec((n_hidden, 1), single_buffer),      # b1 column
            _resident_spec((n_out, n_hidden), single_buffer),  # W2 (VMEM-resident)
            _resident_spec((n_out, 1), single_buffer),         # b2 column
        ],
        out_specs=pl.BlockSpec((n_out, tm), lambda i: (0, i)), # lane-dense output
        compiler_params=pltpu.CompilerParams(
            dimension_semantics=("parallel",),                 # megacore on v7x
            vmem_limit_bytes=_vmem_limit_bytes(),              # per-generation cap
        ),
        cost_estimate=pl.CostEstimate(
            flops=flops, transcendentals=0, bytes_accessed=bytes_accessed),
    )(xT, w1, b1c, w2, b2c)


def slp_forward(x, w1, b1c, w2, b2c, *, tm_max=4096):
    """x: (B, n_in); params from prepare_params (torch-layout W, (n,1) biases).
    Returns (B, n_out), matching nn.Linear -> ReLU -> nn.Linear semantics."""
    global _SINGLE_BUFFER_PARAMS_OK
    B, _ = x.shape
    tm = _choose_batch_tile(B, tm_max)

    # Layout plumbing OUTSIDE the kernel: put batch on the 128-lane axis so
    # every in-kernel load/store is lane-dense despite n_in=16 / n_out=8.
    xT = x.T

    if _SINGLE_BUFFER_PARAMS_OK:
        try:
            oT = _forward_transposed(xT, w1, b1c, w2, b2c, tm, x.dtype, True)
            return oT.T
        except Exception:
            _SINGLE_BUFFER_PARAMS_OK = False   # installed JAX rejects Buffered(1)
    oT = _forward_transposed(xT, w1, b1c, w2, b2c, tm, x.dtype, False)
    return oT.T


def slp_reference(x, w1, b1, w2, b2):
    h = jnp.maximum(x @ w1.T + b1, 0.0)
    return h @ w2.T + b2


if __name__ == "__main__":
    # Module config: n_input=16, n_hidden=32, n_output=8.
    n_input, n_hidden, n_output = 16, 32, 8

    key = jax.random.PRNGKey(0)
    kx, kw1, kb1, kw2, kb2 = jax.random.split(key, 5)

    # nn.Linear-style init (uniform +/- 1/sqrt(fan_in)), torch weight layout.
    lim1 = 1.0 / jnp.sqrt(n_input)
    lim2 = 1.0 / jnp.sqrt(n_hidden)
    w1 = jax.random.uniform(kw1, (n_hidden, n_input), jnp.float32, -lim1, lim1)
    b1 = jax.random.uniform(kb1, (n_hidden,), jnp.float32, -lim1, lim1)
    w2 = jax.random.uniform(kw2, (n_output, n_hidden), jnp.float32, -lim2, lim2)
    b2 = jax.random.uniform(kb2, (n_output,), jnp.float32, -lim2, lim2)

    params_f32 = prepare_params(w1, b1, w2, b2)

    ok = True

    # Case 1: tiny batch — single full-batch tile, grid of 1.
    x_small = jax.random.normal(kx, (4, n_input), dtype=jnp.float32)
    out_small = slp_forward(x_small, *params_f32)
    jax.block_until_ready(out_small)
    ref_small = slp_reference(x_small, w1, b1, w2, b2)
    ok &= bool(jnp.allclose(out_small, ref_small, atol=1e-5, rtol=1e-5))
    ok &= out_small.shape == (4, n_output)

    # Case 2: streamed batch with >=2 grid steps and a partial last lane-tile
    # (B=300, tm_max=128 -> tm=128, grid=3, last tile has 44 valid columns).
    x_big = jax.random.normal(kx, (300, n_input), dtype=jnp.float32)
    out_big = slp_forward(x_big, *params_f32, tm_max=128)
    jax.block_until_ready(out_big)
    ref_big = slp_reference(x_big, w1, b1, w2, b2)
    ok &= bool(jnp.allclose(out_big, ref_big, atol=1e-5, rtol=1e-5))
    ok &= out_big.shape == (300, n_output)

    # Case 3: bf16-streaming path (halves HBM bytes on v6e/v7x); f32
    # accumulation + f32 bias/ReLU epilogue, checked loosely vs. f32 reference.
    params_bf16 = prepare_params(w1, b1, w2, b2, param_dtype=jnp.bfloat16)
    out_bf16 = slp_forward(x_big.astype(jnp.bfloat16), *params_bf16, tm_max=128)
    jax.block_until_ready(out_bf16)
    ok &= bool(jnp.allclose(out_bf16.astype(jnp.float32), ref_big,
                            atol=5e-2, rtol=5e-2))
    ok &= out_bf16.dtype == jnp.bfloat16

    assert ok
    print("KERNEL_OK")
</pallas_src>

<mosaic_0001>
module attributes {stable_mosaic.version = 11 : i64} {
  func.func @mlp_kernel(%arg0: i32, %arg1: memref<16x4xf32, #tpu.memory_space<vmem>>, %arg2: memref<32x16xf32, #tpu.memory_space<vmem>>, %arg3: memref<32x1xf32, #tpu.memory_space<vmem>>, %arg4: memref<8x32xf32, #tpu.memory_space<vmem>>, %arg5: memref<8x1xf32, #tpu.memory_space<vmem>>, %arg6: memref<8x4xf32, #tpu.memory_space<vmem>>) attributes {dimension_semantics = [#tpu.dimension_semantics<parallel>], iteration_bounds = array<i64: 1>, scalar_prefetch = 0 : i64, scratch_operands = 0 : i64, tpu.core_type = #tpu.core_type<tc>, window_params = [{transform_indices = @transform_0, window_bounds = array<i64: 16, 4>}, {pipeline_mode = #tpu.pipeline_mode<synchronous>, transform_indices = @transform_1, window_bounds = array<i64: 32, 16>}, {pipeline_mode = #tpu.pipeline_mode<synchronous>, transform_indices = @transform_2, window_bounds = array<i64: 32, 1>}, {pipeline_mode = #tpu.pipeline_mode<synchronous>, transform_indices = @transform_3, window_bounds = array<i64: 8, 32>}, {pipeline_mode = #tpu.pipeline_mode<synchronous>, transform_indices = @transform_4, window_bounds = array<i64: 8, 1>}, {transform_indices = @transform_5, window_bounds = array<i64: 8, 4>}]} {
    %c0 = arith.constant 0 : index
    %c0_0 = arith.constant 0 : index
    %0 = vector.load %arg1[%c0, %c0_0] : memref<16x4xf32, #tpu.memory_space<vmem>>, vector<16x4xf32>
    %c0_1 = arith.constant 0 : index
    %c0_2 = arith.constant 0 : index
    %1 = vector.load %arg2[%c0_1, %c0_2] : memref<32x16xf32, #tpu.memory_space<vmem>>, vector<32x16xf32>
    %cst = arith.constant dense<0.000000e+00> : vector<32x4xf32>
    %2 = tpu.matmul %1, %0, %cst {dimension_numbers = #tpu.dot_dimension_numbers<[1], [0], [0], [1], [0, 0, 1, 1], [], []>} : vector<32x16xf32>, vector<16x4xf32>, vector<32x4xf32> -> vector<32x4xf32>
    %c0_3 = arith.constant 0 : index
    %c0_4 = arith.constant 0 : index
    %3 = vector.load %arg3[%c0_3, %c0_4] : memref<32x1xf32, #tpu.memory_space<vmem>>, vector<32x1xf32>
    %4 = vector.broadcast %3 : vector<32x1xf32> to vector<32x4xf32>
    %5 = arith.addf %2, %4 : vector<32x4xf32>
    %cst_5 = arith.constant 0.000000e+00 : f32
    %6 = vector.broadcast %cst_5 : f32 to vector<32x4xf32>
    %7 = arith.maximumf %5, %6 : vector<32x4xf32>
    %c0_6 = arith.constant 0 : index
    %c0_7 = arith.constant 0 : index
    %8 = vector.load %arg4[%c0_6, %c0_7] : memref<8x32xf32, #tpu.memory_space<vmem>>, vector<8x32xf32>
    %cst_8 = arith.constant dense<0.000000e+00> : vector<8x4xf32>
    %9 = tpu.matmul %8, %7, %cst_8 {dimension_numbers = #tpu.dot_dimension_numbers<[1], [0], [0], [1], [0, 0, 1, 1], [], []>} : vector<8x32xf32>, vector<32x4xf32>, vector<8x4xf32> -> vector<8x4xf32>
    %c0_9 = arith.constant 0 : index
    %c0_10 = arith.constant 0 : index
    %10 = vector.load %arg5[%c0_9, %c0_10] : memref<8x1xf32, #tpu.memory_space<vmem>>, vector<8x1xf32>
    %11 = vector.broadcast %10 : vector<8x1xf32> to vector<8x4xf32>
    %12 = arith.addf %9, %11 : vector<8x4xf32>
    %c0_11 = arith.constant 0 : index
    %c0_12 = arith.constant 0 : index
    %13 = vector.load %arg6[%c0_11, %c0_12] : memref<8x4xf32, #tpu.memory_space<vmem>>, vector<8x4xf32>
    tpu.vector_store %arg6[%c0_11, %c0_12], %12 {strides = array<i32>} : memref<8x4xf32, #tpu.memory_space<vmem>>, vector<8x4xf32>,
    return
  }
  func.func @transform_0(%arg0: i32) -> (i32, i32) {
    %c0_i32 = arith.constant 0 : i32
    %c0_i32_0 = arith.constant 0 : i32
    return %c0_i32, %arg0 : i32, i32
  }
  func.func @transform_1(%arg0: i32) -> (i32, i32) {
    %c0_i32 = arith.constant 0 : i32
    %c0_i32_0 = arith.constant 0 : i32
    %c0_i32_1 = arith.constant 0 : i32
    return %c0_i32, %c0_i32_0 : i32, i32
  }
  func.func @transform_2(%arg0: i32) -> (i32, i32) {
    %c0_i32 = arith.constant 0 : i32
    %c0_i32_0 = arith.constant 0 : i32
    %c0_i32_1 = arith.constant 0 : i32
    return %c0_i32, %c0_i32_0 : i32, i32
  }
  func.func @transform_3(%arg0: i32) -> (i32, i32) {
    %c0_i32 = arith.constant 0 : i32
    %c0_i32_0 = arith.constant 0 : i32
    %c0_i32_1 = arith.constant 0 : i32
    return %c0_i32, %c0_i32_0 : i32, i32
  }
  func.func @transform_4(%arg0: i32) -> (i32, i32) {
    %c0_i32 = arith.constant 0 : i32
    %c0_i32_0 = arith.constant 0 : i32
    %c0_i32_1 = arith.constant 0 : i32
    return %c0_i32, %c0_i32_0 : i32, i32
  }
  func.func @transform_5(%arg0: i32) -> (i32, i32) {
    %c0_i32 = arith.constant 0 : i32
    %c0_i32_0 = arith.constant 0 : i32
    return %c0_i32, %arg0 : i32, i32
  }
}

module attributes {stable_mosaic.version = 11 : i64} {
  func.func @mlp_kernel(%arg0: i32, %arg1: memref<16x4xf32, #tpu.memory_space<vmem>>, %arg2: memref<32x16xf32, #tpu.memory_space<vmem>>, %arg3: memref<32x1xf32, #tpu.memory_space<vmem>>, %arg4: memref<8x32xf32, #tpu.memory_space<vmem>>, %arg5: memref<8x1xf32, #tpu.memory_space<vmem>>, %arg6: memref<8x4xf32, #tpu.memory_space<vmem>>) attributes {dimension_semantics = [#tpu.dimension_semantics<parallel>], iteration_bounds = array<i64: 1>, scalar_prefetch = 0 : i64, scratch_operands = 0 : i64, tpu.core_type = #tpu.core_type<tc>, window_params = [{transform_indices = @transform_0, window_bounds = array<i64: 16, 4>}, {pipeline_mode = #tpu.pipeline_mode<synchronous>, transform_indices = @transform_1, window_bounds = array<i64: 32, 16>}, {pipeline_mode = #tpu.pipeline_mode<synchronous>, transform_indices = @transform_2, window_bounds = array<i64: 32, 1>}, {pipeline_mode = #tpu.pipeline_mode<synchronous>, transform_indices = @transform_3, window_bounds = array<i64: 8, 32>}, {pipeline_mode = #tpu.pipeline_mode<synchronous>, transform_indices = @transform_4, window_bounds = array<i64: 8, 1>}, {transform_indices = @transform_5, window_bounds = array<i64: 8, 4>}]} {
    %c0 = arith.constant 0 : index
    %c0_0 = arith.constant 0 : index
    %0 = vector.load %arg1[%c0, %c0_0] : memref<16x4xf32, #tpu.memory_space<vmem>>, vector<16x4xf32>
    %c0_1 = arith.constant 0 : index
    %c0_2 = arith.constant 0 : index
    %1 = vector.load %arg2[%c0_1, %c0_2] : memref<32x16xf32, #tpu.memory_space<vmem>>, vector<32x16xf32>
    %cst = arith.constant dense<0.000000e+00> : vector<32x4xf32>
    %2 = tpu.matmul %1, %0, %cst {dimension_numbers = #tpu.dot_dimension_numbers<[1], [0], [0], [1], [0, 0, 1, 1], [], []>} : vector<32x16xf32>, vector<16x4xf32>, vector<32x4xf32> -> vector<32x4xf32>
    %c0_3 = arith.constant 0 : index
    %c0_4 = arith.constant 0 : index
    %3 = vector.load %arg3[%c0_3, %c0_4] : memref<32x1xf32, #tpu.memory_space<vmem>>, vector<32x1xf32>
    %4 = vector.broadcast %3 : vector<32x1xf32> to vector<32x4xf32>
    %5 = arith.addf %2, %4 : vector<32x4xf32>
    %cst_5 = arith.constant 0.000000e+00 : f32
    %6 = vector.broadcast %cst_5 : f32 to vector<32x4xf32>
    %7 = arith.maximumf %5, %6 : vector<32x4xf32>
    %c0_6 = arith.constant 0 : index
    %c0_7 = arith.constant 0 : index
    %8 = vector.load %arg4[%c0_6, %c0_7] : memref<8x32xf32, #tpu.memory_space<vmem>>, vector<8x32xf32>
    %cst_8 = arith.constant dense<0.000000e+00> : vector<8x4xf32>
    %9 = tpu.matmul %8, %7, %cst_8 {dimension_numbers = #tpu.dot_dimension_numbers<[1], [0], [0], [1], [0, 0, 1, 1], [], []>} : vector<8x32xf32>, vector<32x4xf32>, vector<8x4xf32> -> vector<8x4xf32>
    %c0_9 = arith.constant 0 : index
    %c0_10 = arith.constant 0 : index
    %10 = vector.load %arg5[%c0_9, %c0_10] : memref<8x1xf32, #tpu.memory_space<vmem>>, vector<8x1xf32>
    %11 = vector.broadcast %10 : vector<8x1xf32> to vector<8x4xf32>
    %12 = arith.addf %9, %11 : vector<8x4xf32>
    %c0_11 = arith.constant 0 : index
    %c0_12 = arith.constant 0 : index
    %13 = vector.load %arg6[%c0_11, %c0_12] : memref<8x4xf32, #tpu.memory_space<vmem>>, vector<8x4xf32>
    tpu.vector_store %arg6[%c0_11, %c0_12], %12 {strides = array<i32>} : memref<8x4xf32, #tpu.memory_space<vmem>>, vector<8x4xf32>,
    return
  }
  func.func @transform_0(%arg0: i32) -> (i32, i32) {
    %c0_i32 = arith.constant 0 : i32
    %c0_i32_0 = arith.constant 0 : i32
    return %c0_i32, %arg0 : i32, i32
  }
  func.func @transform_1(%arg0: i32) -> (i32, i32) {
    %c0_i32 = arith.constant 0 : i32
    %c0_i32_0 = arith.constant 0 : i32
    %c0_i32_1 = arith.constant 0 : i32
    return %c0_i32, %c0_i32_0 : i32, i32
  }
  func.func @transform_2(%arg0: i32) -> (i32, i32) {
    %c0_i32 = arith.constant 0 : i32
    %c0_i32_0 = arith.constant 0 : i32
    %c0_i32_1 = arith.constant 0 : i32
    return %c0_i32, %c0_i32_0 : i32, i32
  }
  func.func @transform_3(%arg0: i32) -> (i32, i32) {
    %c0_i32 = arith.constant 0 : i32
    %c0_i32_0 = arith.constant 0 : i32
    %c0_i32_1 = arith.constant 0 : i32
    return %c0_i32, %c0_i32_0 : i32, i32
  }
  func.func @transform_4(%arg0: i32) -> (i32, i32) {
    %c0_i32 = arith.constant 0 : i32
    %c0_i32_0 = arith.constant 0 : i32
    %c0_i32_1 = arith.constant 0 : i32
    return %c0_i32, %c0_i32_0 : i32, i32
  }
  func.func @transform_5(%arg0: i32) -> (i32, i32) {
    %c0_i32 = arith.constant 0 : i32
    %c0_i32_0 = arith.constant 0 : i32
    return %c0_i32, %arg0 : i32, i32
  }
}

</mosaic_0001>

<bundles_post_ra>
// kernel: tpu_custom_call.1
= control target key start
LH: loop header
LB: loop body
LE: loop exit
PB: predicated region body
PF: predicated region fallthrough
CT: control target
= control target key end

     0   :  { %vm50_vm0 = vcmask 130048   ;;  %v292_v3 = vmov 0   ;;  %v293_v13 = vmov 0.0|0.0   ;;  %vm294_vm1 = vmmov 0   ;;  %s369_s0 = inlined_call_operand.vmem [shape: f32[16,4], index: 0, kind: input, shape index: {}]   ;;  %s370_s1 = inlined_call_operand.vmem [shape: f32[32,16], index: 1, kind: input, shape index: {}]   ;;  %s371_s2 = inlined_call_operand.vmem [shape: f32[32,1], index: 2, kind: input, shape index: {}]   ;;  %s372_s4 = inlined_call_operand.vmem [shape: f32[8,1], index: 4, kind: input, shape index: {}]   ;;  %s373_s3 = inlined_call_operand.vmem [shape: f32[8,32], index: 3, kind: input, shape index: {}]   ;;  %s374_s5 = inlined_call_operand.vmem [shape: f32[8,4], index: 5, kind: output, shape index: {}]  }
   0x1   :  { %v20_v0 = vld [vmem:[%s369_s0] sm:$0xff]  ;;  %v21_v1 = vld [vmem:[%s369_s0 + $0x8] sm:$0xff]  ;;  %290 = vset.pattern.permute.xlu0 %v292_v3  ;;  %291 = vset.pattern.permute.xlu1 %v292_v3  ;;  %v28_v6 = vld [vmem:[%s371_s2 + $0x10] sm:$0xff]  ;;  %v295_v14 = vmov 0.0   ;;  %vm159_vm2 = vcmask 261120   ;;  %vm233_vm3 = vcmask 31744  }
   0x2   :  { %v22_v2 = vld [vmem:[%s370_s1] sm:$0xff]  ;;  %v276_v4 = vpack.c.bf16 %v21_v1, %v20_v0  ;;  %v23_v7 = vld [vmem:[%s370_s1 + $0x8] sm:$0xff]  ;;  %42 = vperm.xlu1 %291, %v28_v6   ;;  %v24_v9 = vld [vmem:[%s370_s1 + $0x10] sm:$0xff]  ;;  %280 = vmatprep.subr.bf16.mxu1 %v293_v13 }
   0x3   :  { %259 = vmatprep.mubr.msk.f32.mxu0 %vm50_vm0, %v22_v2  ;;  %v26_v5 = vld [vmem:[%s371_s2] sm:$0xff]  ;;  %v27_v8 = vld [vmem:[%s371_s2 + $0x8] sm:$0xff]  ;;  %v29_v10 = vld [vmem:[%s371_s2 + $0x18] sm:$0xff]  ;;  %273 = vmatprep.mubr.msk.f32.mxu1 %vm294_vm1, %v295_v14 }
   0x4   :  { %277 = vmatprep.subr.bf16.mxu0 %v276_v4  ;;  %32 = vperm.xlu0 %290, %v26_v5   ;;  %v25_v11 = vld [vmem:[%s370_s1 + $0x18] sm:$0xff]  ;;  %v153_v12 = vld [vmem:[%s372_s4] sm:$0xff] }
   0x5   :  { %279 = vmatpush3.bf16.msra.mxu0 %v276_v4  ;;  %v152_v33 = vld [vmem:[%s373_s3] sm:$0xff] }
   0x6   :  { %47 = vperm.xlu1 %291, %v29_v10  }
   0x8   :  { %260 = vmatmul.mubr.msk.f32.vlgmr.msra.gmra.mrb[0].mxu0 %vm50_vm0, %v23_v7  ;;  %37 = vperm.xlu0 %290, %v27_v8  }
   0x9   :  { %262 = vmatprep.mubr.msk.f32.mxu0 %vm50_vm0, %v24_v9 }
   0xc   :  { %263 = vmatmul.mubr.msk.f32.gmra.mrb[2].mxu0 %vm50_vm0, %v25_v11  ;;  %156 = vperm.xlu0 %290, %v153_v12  }
  0x81   :  { %v43_v16 = vpop.permute.xlu1 %42 }
  0x83   :  { %v33_v15 = vpop.permute.xlu0 %32 }
  0x85   :  { %v48_v23 = vpop.permute.xlu1 %47 }
  0x87   :  { %v38_v17 = vpop.permute.xlu0 %37 }
  0x8b   :  { %v157_v34 = vpop.permute.xlu0 %156 }
  0xdb   :  { %v261_v18 = vpop.f32.mrb[0].mxu0 }
  0xdc   :  { %v135_v19 = vadd.f32 %v261_v18, %v38_v17  ;;  %v129_v20 = vpop.f32.mrb[1].mxu0 }
  0xdd   :  { %v130_v21 = vadd.f32 %v129_v20, %v33_v15 }
  0xde   :  { %v149_v22 = vmax.f32 %v135_v19, 0.0 }
  0xdf   :  { %v148_v24 = vmax.f32 %v130_v21, 0.0  ;;  %v264_v25 = vpop.f32.mrb[2].mxu0 }
  0xe0   :  { %v145_v26 = vadd.f32 %v264_v25, %v48_v23  ;;  %v139_v27 = vpop.f32.mrb[3].mxu0 }
  0xe1   :  { %v140_v28 = vadd.f32 %v139_v27, %v43_v16  ;;  %v281_v29 = vpack.c.bf16 %v149_v22, %v148_v24 }
  0xe2   :  { %v151_v30 = vmax.f32 %v145_v26, 0.0 }
  0xe3   :  { %v150_v31 = vmax.f32 %v140_v28, 0.0  ;;  %282 = vmatpush3.bf16.msra.mxu1 %v281_v29 }
  0xe4   :  { %283 = vmatprep.subr.bf16.mxu1 %v293_v13 }
  0xe5   :  { %v284_v32 = vpack.c.bf16 %v151_v30, %v150_v31 }
  0xe7   :  { %285 = vmatpush3.bf16.msra.mxu1 %v284_v32 }
  0xea   :  { %274 = vmatmul.mubr.msk.f32.vlgmr.msra.gmra.mrb[0].mxu1 %vm159_vm2, %v152_v33 }
 0x1bd   :  { %v229_v35 = vpop.f32.mrb[0].mxu1 }
 0x1be   :  { %v230_v36 = vadd.f32 %v229_v35, %v157_v34  ;;  %v275_v37 = vpop.f32.mrb[1].mxu1 }
 0x1c0   :  { %234 = vst.msk [vmem:[%s374_s5] sm:$0xff] %vm233_vm3, %v230_v36 }

// kernel: tpu_custom_call.1
= control target key start
LH: loop header
LB: loop body
LE: loop exit
PB: predicated region body
PF: predicated region fallthrough
CT: control target
= control target key end

     0   :  { %vm50_vm0 = vcmask 130048   ;;  %v292_v3 = vmov 0   ;;  %v293_v13 = vmov 0.0|0.0   ;;  %vm294_vm1 = vmmov 0   ;;  %s369_s0 = inlined_call_operand.vmem [shape: f32[16,4], index: 0, kind: input, shape index: {}]   ;;  %s370_s1 = inlined_call_operand.vmem [shape: f32[32,16], index: 1, kind: input, shape index: {}]   ;;  %s371_s2 = inlined_call_operand.vmem [shape: f32[32,1], index: 2, kind: input, shape index: {}]   ;;  %s372_s4 = inlined_call_operand.vmem [shape: f32[8,1], index: 4, kind: input, shape index: {}]   ;;  %s373_s3 = inlined_call_operand.vmem [shape: f32[8,32], index: 3, kind: input, shape index: {}]   ;;  %s374_s5 = inlined_call_operand.vmem [shape: f32[8,4], index: 5, kind: output, shape index: {}]  }
   0x1   :  { %v20_v0 = vld [vmem:[%s369_s0] sm:$0xff]  ;;  %v21_v1 = vld [vmem:[%s369_s0 + $0x8] sm:$0xff]  ;;  %290 = vset.pattern.permute.xlu0 %v292_v3  ;;  %291 = vset.pattern.permute.xlu1 %v292_v3  ;;  %v28_v6 = vld [vmem:[%s371_s2 + $0x10] sm:$0xff]  ;;  %v295_v14 = vmov 0.0   ;;  %vm159_vm2 = vcmask 261120   ;;  %vm233_vm3 = vcmask 31744  }
   0x2   :  { %v22_v2 = vld [vmem:[%s370_s1] sm:$0xff]  ;;  %v276_v4 = vpack.c.bf16 %v21_v1, %v20_v0  ;;  %v23_v7 = vld [vmem:[%s370_s1 + $0x8] sm:$0xff]  ;;  %42 = vperm.xlu1 %291, %v28_v6   ;;  %v24_v9 = vld [vmem:[%s370_s1 + $0x10] sm:$0xff]  ;;  %280 = vmatprep.subr.bf16.mxu1 %v293_v13 }
   0x3   :  { %259 = vmatprep.mubr.msk.f32.mxu0 %vm50_vm0, %v22_v2  ;;  %v26_v5 = vld [vmem:[%s371_s2] sm:$0xff]  ;;  %v27_v8 = vld [vmem:[%s371_s2 + $0x8] sm:$0xff]  ;;  %v29_v10 = vld [vmem:[%s371_s2 + $0x18] sm:$0xff]  ;;  %273 = vmatprep.mubr.msk.f32.mxu1 %vm294_vm1, %v295_v14 }
   0x4   :  { %277 = vmatprep.subr.bf16.mxu0 %v276_v4  ;;  %32 = vperm.xlu0 %290, %v26_v5   ;;  %v25_v11 = vld [vmem:[%s370_s1 + $0x18] sm:$0xff]  ;;  %v153_v12 = vld [vmem:[%s372_s4] sm:$0xff] }
   0x5   :  { %279 = vmatpush3.bf16.msra.mxu0 %v276_v4  ;;  %v152_v33 = vld [vmem:[%s373_s3] sm:$0xff] }
   0x6   :  { %47 = vperm.xlu1 %291, %v29_v10  }
   0x8   :  { %260 = vmatmul.mubr.msk.f32.vlgmr.msra.gmra.mrb[0].mxu0 %vm50_vm0, %v23_v7  ;;  %37 = vperm.xlu0 %290, %v27_v8  }
   0x9   :  { %262 = vmatprep.mubr.msk.f32.mxu0 %vm50_vm0, %v24_v9 }
   0xc   :  { %263 = vmatmul.mubr.msk.f32.gmra.mrb[2].mxu0 %vm50_vm0, %v25_v11  ;;  %156 = vperm.xlu0 %290, %v153_v12  }
  0x81   :  { %v43_v16 = vpop.permute.xlu1 %42 }
  0x83   :  { %v33_v15 = vpop.permute.xlu0 %32 }
  0x85   :  { %v48_v23 = vpop.permute.xlu1 %47 }
  0x87   :  { %v38_v17 = vpop.permute.xlu0 %37 }
  0x8b   :  { %v157_v34 = vpop.permute.xlu0 %156 }
  0xdb   :  { %v261_v18 = vpop.f32.mrb[0].mxu0 }
  0xdc   :  { %v135_v19 = vadd.f32 %v261_v18, %v38_v17  ;;  %v129_v20 = vpop.f32.mrb[1].mxu0 }
  0xdd   :  { %v130_v21 = vadd.f32 %v129_v20, %v33_v15 }
  0xde   :  { %v149_v22 = vmax.f32 %v135_v19, 0.0 }
  0xdf   :  { %v148_v24 = vmax.f32 %v130_v21, 0.0  ;;  %v264_v25 = vpop.f32.mrb[2].mxu0 }
  0xe0   :  { %v145_v26 = vadd.f32 %v264_v25, %v48_v23  ;;  %v139_v27 = vpop.f32.mrb[3].mxu0 }
  0xe1   :  { %v140_v28 = vadd.f32 %v139_v27, %v43_v16  ;;  %v281_v29 = vpack.c.bf16 %v149_v22, %v148_v24 }
  0xe2   :  { %v151_v30 = vmax.f32 %v145_v26, 0.0 }
  0xe3   :  { %v150_v31 = vmax.f32 %v140_v28, 0.0  ;;  %282 = vmatpush3.bf16.msra.mxu1 %v281_v29 }
  0xe4   :  { %283 = vmatprep.subr.bf16.mxu1 %v293_v13 }
  0xe5   :  { %v284_v32 = vpack.c.bf16 %v151_v30, %v150_v31 }
  0xe7   :  { %285 = vmatpush3.bf16.msra.mxu1 %v284_v32 }
  0xea   :  { %274 = vmatmul.mubr.msk.f32.vlgmr.msra.gmra.mrb[0].mxu1 %vm159_vm2, %v152_v33 }
 0x1bd   :  { %v229_v35 = vpop.f32.mrb[0].mxu1 }
 0x1be   :  { %v230_v36 = vadd.f32 %v229_v35, %v157_v34  ;;  %v275_v37 = vpop.f32.mrb[1].mxu1 }
 0x1c0   :  { %234 = vst.msk [vmem:[%s374_s5] sm:$0xff] %vm233_vm3, %v230_v36 }

</bundles_post_ra>
